<compile_context>
chip_gen: v6e
topology: v6e:2x2x1
jax: 0.10.0
libtpu: 0.0.40
codegen_flags: <defaults>
</compile_context>

<pallas_src>
import functools

import jax
import jax.numpy as jnp
from jax import lax
from jax.experimental import pallas as pl
from jax.experimental.pallas import tpu as pltpu

LANES = 128
SUBLANES = 8


def _round_up(x: int, m: int) -> int:
    return -(-x // m) * m


def _charbonnier_kernel(out_ref, tgt_ref, psum_ref, acc_ref, *,
                        eps, rows, tile_rows, steps_per_core, needs_mask):
    p = pl.program_id(0)               # core-split index ("parallel")
    i = pl.program_id(1)               # reduction step on this core ("arbitrary")
    nsteps = pl.num_programs(1)

    @pl.when(i == 0)
    def _():
        acc_ref[...] = jnp.zeros_like(acc_ref)

    diff = out_ref[...].astype(jnp.float32) - tgt_ref[...].astype(jnp.float32)
    val = jnp.sqrt(diff * diff + jnp.float32(eps * eps))

    def _fold(v):
        # (tile_rows, 128) -> (tile_rows//8, 8, 128) is a free view (splits the
        # sublane-major axis, no (8,128) tile crossing); the sum over the
        # leading axis is a pure VALU tree-add into one vreg.
        return v.reshape(-1, SUBLANES, LANES).sum(axis=0)

    if needs_mask:
        # Unclamped flat block index. Overrun grid points (2-core split of an
        # odd block count) get valid_here <= 0 and contribute nothing; the
        # partial last block gets a row-level mask. Every fully-valid block
        # takes the plain (mask-free) add path.
        flat = p * steps_per_core + i
        valid_here = rows - flat * tile_rows   # rows of this block that are real

        @pl.when(valid_here >= tile_rows)
        def _():
            acc_ref[...] += _fold(val)

        @pl.when(valid_here < tile_rows)
        def _():
            row_ids = lax.broadcasted_iota(jnp.int32, val.shape, 0)
            # Select (not multiply): padded OOB rows may hold NaN/Inf garbage.
            masked = jnp.where(row_ids < valid_here, val, jnp.float32(0.0))
            acc_ref[...] += _fold(masked)
    else:
        acc_ref[...] += _fold(val)

    @pl.when(i == nsteps - 1)
    def _():
        # Cross-lane/sublane reduce of a single vreg + SMEM store: once per core.
        psum_ref[0, 0] = jnp.sum(acc_ref[...])


def _pick_tile_rows(rows: int, itemsize: int) -> int:
    # Byte budget for the double-buffered input blocks (2 inputs x 2 buffers).
    # 8 MiB keeps v5e inside its 16 MiB default scoped VMEM (4096-row f32
    # blocks, ~85%+ of roofline); on v7x (64 MiB physical VMEM, 32 MiB default
    # scoped, ~3.2 TB/s per TC) a larger block amortizes per-grid-step overhead.
    budget = 8 * 1024 * 1024
    try:
        if pltpu.get_tpu_info().vmem_capacity_bytes <= 64 * 1024 * 1024:
            budget = 16 * 1024 * 1024          # v7x
    except Exception:                          # conservative fallback
        pass
    tr = budget // (2 * 2 * LANES * itemsize)
    tr = max(SUBLANES, (tr // SUBLANES) * SUBLANES)
    return min(tr, _round_up(rows, SUBLANES))


def charbonnier_loss(out, tgt, eps: float = 0.001, tile_rows=None):
    assert out.shape == tgt.shape
    n_valid = int(out.size)
    assert n_valid > 0

    out_flat = out.reshape(-1)
    tgt_flat = tgt.reshape(-1)

    rem = n_valid % LANES
    n_main = n_valid - rem
    rows = n_main // LANES

    # Lane-ragged tail (< 128 elements): tiny jnp epilogue instead of
    # jnp.pad-ing (copying) both full inputs.
    if rem:
        d_tail = (out_flat[n_main:].astype(jnp.float32)
                  - tgt_flat[n_main:].astype(jnp.float32))
        tail_sum = jnp.sum(jnp.sqrt(d_tail * d_tail + jnp.float32(eps * eps)))
    else:
        tail_sum = jnp.float32(0.0)

    if rows == 0:
        return tail_sum / jnp.float32(n_valid)

    out2d = out_flat[:n_main].reshape(rows, LANES)
    tgt2d = tgt_flat[:n_main].reshape(rows, LANES)

    itemsize = out.dtype.itemsize
    if tile_rows is None:
        tile_rows = _pick_tile_rows(rows, itemsize)
    else:
        tile_rows = min(_round_up(max(int(tile_rows), SUBLANES), SUBLANES),
                        _round_up(rows, SUBLANES))

    nblocks = -(-rows // tile_rows)   # cdiv
    # Unconditional 2-way split whenever there are >= 2 blocks: shards the
    # leading "parallel" axis across v7x's two TensorCores (harmless sequential
    # loop on single-TC v5e/v6e). Odd block counts -> clamped index map +
    # in-kernel masking of the (at most one) overrun block.
    ncores = 2 if nblocks >= 2 else 1
    steps_per_core = -(-nblocks // ncores)
    needs_mask = (ncores * steps_per_core * tile_rows) != rows

    kernel = functools.partial(
        _charbonnier_kernel, eps=float(eps), rows=rows, tile_rows=tile_rows,
        steps_per_core=steps_per_core, needs_mask=needs_mask)

    def _in_map(p, i):
        # Clamp so the overrun grid point on the second core re-reads the last
        # block (its contribution is masked to zero in the kernel).
        return (jnp.minimum(p * steps_per_core + i, nblocks - 1), 0)

    cost = pl.CostEstimate(
        flops=5 * n_main,
        transcendentals=n_main,
        bytes_accessed=2 * n_main * itemsize + 4 * ncores)

    partials = pl.pallas_call(
        kernel,
        out_shape=jax.ShapeDtypeStruct((ncores, 1), jnp.float32),
        grid_spec=pltpu.PrefetchScalarGridSpec(
            num_scalar_prefetch=0,
            grid=(ncores, steps_per_core),
            in_specs=[
                pl.BlockSpec((tile_rows, LANES), _in_map),
                pl.BlockSpec((tile_rows, LANES), _in_map),
            ],
            out_specs=pl.BlockSpec((1, 1), lambda p, i: (p, 0),
                                   memory_space=pltpu.SMEM),
            scratch_shapes=[pltpu.VMEM((SUBLANES, LANES), jnp.float32)],
        ),
        compiler_params=pltpu.CompilerParams(
            dimension_semantics=("parallel", "arbitrary")),
        cost_estimate=cost,
    )(out2d, tgt2d)

    return (jnp.sum(partials) + tail_sum) / jnp.float32(n_valid)


def _ref_loss(out, tgt, eps=0.001):
    diff = out.astype(jnp.float32) - tgt.astype(jnp.float32)
    return jnp.mean(jnp.sqrt(diff * diff + jnp.float32(eps * eps)))


if __name__ == "__main__":
    key = jax.random.PRNGKey(0)
    ks = jax.random.split(key, 8)

    # 1) Small NCHW output/target pair -> single block, no mask, auto tile.
    out = jax.random.normal(ks[0], (2, 4, 16, 16), dtype=jnp.float32)
    tgt = jax.random.normal(ks[1], (2, 4, 16, 16), dtype=jnp.float32)
    loss = jax.block_until_ready(charbonnier_loss(out, tgt, eps=0.001))
    assert jnp.allclose(loss, _ref_loss(out, tgt), atol=1e-6, rtol=1e-5)

    # 2) Same data, tiny tile -> even block count, 2-way core split, no mask.
    loss2 = jax.block_until_ready(charbonnier_loss(out, tgt, eps=0.001, tile_rows=8))
    assert jnp.allclose(loss2, _ref_loss(out, tgt), atol=1e-6, rtol=1e-5)

    # 3) Lane-ragged element count -> jnp tail epilogue + sublane-padded
    #    (partial) block masking in-kernel, no host-side pad copies.
    o3 = jax.random.normal(ks[2], (2, 3, 7, 11), dtype=jnp.float32)
    t3 = jax.random.normal(ks[3], (2, 3, 7, 11), dtype=jnp.float32)
    loss3 = jax.block_until_ready(charbonnier_loss(o3, t3, eps=0.001))
    assert jnp.allclose(loss3, _ref_loss(o3, t3), atol=1e-6, rtol=1e-5)

    # 4) Odd block count with the 2-way split -> clamped index map + masked
    #    overrun block + partial last block.
    o4 = jax.random.normal(ks[4], (1, 1, 20, 128), dtype=jnp.float32)
    t4 = jax.random.normal(ks[5], (1, 1, 20, 128), dtype=jnp.float32)
    loss4 = jax.block_until_ready(charbonnier_loss(o4, t4, eps=0.001, tile_rows=8))
    assert jnp.allclose(loss4, _ref_loss(o4, t4), atol=1e-6, rtol=1e-5)

    # 5) bf16 inputs streamed at native width (half the HBM traffic), cast to
    #    f32 in-register inside the kernel.
    o5 = jax.random.normal(ks[6], (2, 4, 16, 16), dtype=jnp.bfloat16)
    t5 = jax.random.normal(ks[7], (2, 4, 16, 16), dtype=jnp.bfloat16)
    loss5 = jax.block_until_ready(charbonnier_loss(o5, t5, eps=0.001))
    assert jnp.allclose(loss5, _ref_loss(o5, t5), atol=1e-6, rtol=1e-5)

    print("KERNEL_OK")
</pallas_src>

<mosaic_0001>
module attributes {stable_mosaic.version = 11 : i64} {
  func.func @_charbonnier_kernel(%arg0: i32, %arg1: i32, %arg2: memref<16x128xf32, #tpu.memory_space<vmem>>, %arg3: memref<16x128xf32, #tpu.memory_space<vmem>>, %arg4: memref<1x1xf32, #tpu.memory_space<smem>>, %arg5: memref<8x128xf32, #tpu.memory_space<vmem>>) attributes {dimension_semantics = [#tpu.dimension_semantics<parallel>, #tpu.dimension_semantics<arbitrary>], iteration_bounds = array<i64: 1, 1>, scalar_prefetch = 0 : i64, scratch_operands = 1 : i64, tpu.core_type = #tpu.core_type<tc>, window_params = [{transform_indices = @transform_0, window_bounds = array<i64: 16, 128>}, {transform_indices = @transform_1, window_bounds = array<i64: 16, 128>}, {transform_indices = @transform_2, window_bounds = array<i64: 1, 1>}]} {
    %c0_i32 = arith.constant 0 : i32
    %0 = arith.cmpi eq, %arg1, %c0_i32 : i32
    %1 = arith.extui %0 : i1 to i32
    %c0_i32_0 = arith.constant 0 : i32
    %2 = arith.cmpi ne, %1, %c0_i32_0 : i32
    scf.if %2 {
      %cst_11 = arith.constant 0.000000e+00 : f32
      %18 = vector.broadcast %cst_11 : f32 to vector<8x128xf32>
      %c0_12 = arith.constant 0 : index
      %c0_13 = arith.constant 0 : index
      %19 = vector.load %arg5[%c0_12, %c0_13] : memref<8x128xf32, #tpu.memory_space<vmem>>, vector<8x128xf32>
      tpu.vector_store %arg5[%c0_12, %c0_13], %18 {strides = array<i32>} : memref<8x128xf32, #tpu.memory_space<vmem>>, vector<8x128xf32>,
    } else {
    }
    %c0 = arith.constant 0 : index
    %c0_1 = arith.constant 0 : index
    %3 = vector.load %arg2[%c0, %c0_1] : memref<16x128xf32, #tpu.memory_space<vmem>>, vector<16x128xf32>
    %c0_2 = arith.constant 0 : index
    %c0_3 = arith.constant 0 : index
    %4 = vector.load %arg3[%c0_2, %c0_3] : memref<16x128xf32, #tpu.memory_space<vmem>>, vector<16x128xf32>
    %5 = arith.subf %3, %4 : vector<16x128xf32>
    %6 = arith.mulf %5, %5 : vector<16x128xf32>
    %cst = arith.constant 9.99999997E-7 : f32
    %7 = vector.broadcast %cst : f32 to vector<16x128xf32>
    %8 = arith.addf %6, %7 : vector<16x128xf32>
    %9 = math.sqrt %8 : vector<16x128xf32>
    %c0_4 = arith.constant 0 : index
    %c0_5 = arith.constant 0 : index
    %10 = vector.load %arg5[%c0_4, %c0_5] : memref<8x128xf32, #tpu.memory_space<vmem>>, vector<8x128xf32>
    %11 = vector.shape_cast %9 : vector<16x128xf32> to vector<2x8x128xf32>
    %cst_6 = arith.constant dense<0.000000e+00> : vector<8x128xf32>
    %12 = vector.multi_reduction <add>, %11, %cst_6 [0] : vector<2x8x128xf32> to vector<8x128xf32>
    %13 = arith.addf %10, %12 : vector<8x128xf32>
    %c0_7 = arith.constant 0 : index
    %c0_8 = arith.constant 0 : index
    %14 = vector.load %arg5[%c0_7, %c0_8] : memref<8x128xf32, #tpu.memory_space<vmem>>, vector<8x128xf32>
    tpu.vector_store %arg5[%c0_7, %c0_8], %13 {strides = array<i32>} : memref<8x128xf32, #tpu.memory_space<vmem>>, vector<8x128xf32>,
    %c0_i32_9 = arith.constant 0 : i32
    %15 = arith.cmpi eq, %arg1, %c0_i32_9 : i32
    %16 = arith.extui %15 : i1 to i32
    %c0_i32_10 = arith.constant 0 : i32
    %17 = arith.cmpi ne, %16, %c0_i32_10 : i32
    scf.if %17 {
      %c0_11 = arith.constant 0 : index
      %c0_12 = arith.constant 0 : index
      %18 = vector.load %arg5[%c0_11, %c0_12] : memref<8x128xf32, #tpu.memory_space<vmem>>, vector<8x128xf32>
      %19 = vector.shape_cast %18 : vector<8x128xf32> to vector<1x8x128xf32>
      %cst_13 = arith.constant dense<0.000000e+00> : vector<1xf32>
      %20 = vector.multi_reduction <add>, %19, %cst_13 [1, 2] : vector<1x8x128xf32> to vector<1xf32>
      %21 = vector.shape_cast %20 : vector<1xf32> to vector<1x1x1xf32>
      %22 = vector.extract %21[0, 0, 0] : f32 from vector<1x1x1xf32>
      %c0_14 = arith.constant 0 : index
      %c0_15 = arith.constant 0 : index
      %23 = memref.load %arg4[%c0_14, %c0_15] : memref<1x1xf32, #tpu.memory_space<smem>>
      memref.store %22, %arg4[%c0_14, %c0_15] : memref<1x1xf32, #tpu.memory_space<smem>>
    } else {
    }
    return
  }
  func.func @transform_0(%arg0: i32, %arg1: i32) -> (i32, i32) {
    %c1_i32 = arith.constant 1 : i32
    %0 = arith.muli %arg0, %c1_i32 : i32
    %1 = arith.addi %0, %arg1 : i32
    %c0_i32 = arith.constant 0 : i32
    %2 = arith.minsi %1, %c0_i32 : i32
    %c0_i32_0 = arith.constant 0 : i32
    %c0_i32_1 = arith.constant 0 : i32
    return %2, %c0_i32_0 : i32, i32
  }
  func.func @transform_1(%arg0: i32, %arg1: i32) -> (i32, i32) {
    %c1_i32 = arith.constant 1 : i32
    %0 = arith.muli %arg0, %c1_i32 : i32
    %1 = arith.addi %0, %arg1 : i32
    %c0_i32 = arith.constant 0 : i32
    %2 = arith.minsi %1, %c0_i32 : i32
    %c0_i32_0 = arith.constant 0 : i32
    %c0_i32_1 = arith.constant 0 : i32
    return %2, %c0_i32_0 : i32, i32
  }
  func.func @transform_2(%arg0: i32, %arg1: i32) -> (i32, i32) {
    %c0_i32 = arith.constant 0 : i32
    %c0_i32_0 = arith.constant 0 : i32
    return %arg0, %c0_i32 : i32, i32
  }
}

</mosaic_0001>

<bundles_post_ra>
// kernel: tpu_custom_call.1
= control target key start
LH: loop header
LB: loop body
LE: loop exit
PB: predicated region body
PF: predicated region fallthrough
CT: control target
= control target key end

     0   :  { %7 = vsyncpa [#allocation4], 0  ;;  %s221_s0 = inlined_call_operand.hbm [shape: f32[16,128], index: 0, kind: input, shape index: {}]   ;;  %s222_s1 = inlined_call_operand.hbm [shape: f32[16,128], index: 1, kind: input, shape index: {}]   ;;  %s223_s2 = inlined_call_operand.hbm [shape: f32[1,1], index: 2, kind: output, shape index: {}]  }
   0x1   :  { %8 = vsyncpa [#allocation7], 0 }
   0x2   :  { %9 = vsyncpa [#allocation5], 0  ;;  %s192_s9 = smov [#allocation3]  }
   0x3   :  { %s21_s10 = sshll.u32 %s192_s9, 4  ;;  %s22_s10 = int_to_ptr.vmem [resolvable:$true] %s21_s10 }
   0x4   :  { %s146_s11 = scalar_lea.vmem %s22_s10, 256  ;;  %p151_p1 = scmp.lt.s32.totalorder %s22_s10, %s22_s10 }
   0x5   :  { %p147_p0 = scmp.ne.s32.totalorder %s22_s10, %s146_s11  ;;  %p152_p2 = scmp.lt.s32.totalorder %s146_s11, %s146_s11 }
   0x7   :  { %p153_p3 = por %p152_p2, %p151_p1 }
   0x9   :  { %p154_p4 = pnand %p153_p3, %p147_p0 }
   0xb   :  { %157 = shalt.err (!%p154_p4)
}
   0xc   :  { %s193_s12 = smov 128   ;;  %s194_s13 = smov 8  }
   0xd   :  { %27 = dma.hbm_to_vmem [thread:$0]  %s221_s0, 256, %s22_s10, [#allocation4], %s193_s12, %s193_s12, %s194_s13  }
   0xe   :  { %s195_s16 = smov [#allocation6]  }
   0xf   :  { %s39_s17 = sshll.u32 %s195_s16, 4  ;;  %s40_s17 = int_to_ptr.vmem [resolvable:$true] %s39_s17 }
  0x10   :  { %s166_s18 = scalar_lea.vmem %s40_s17, 256  ;;  %p171_p6 = scmp.lt.s32.totalorder %s40_s17, %s40_s17 }
  0x11   :  { %p167_p5 = scmp.ne.s32.totalorder %s40_s17, %s166_s18  ;;  %p172_p7 = scmp.lt.s32.totalorder %s166_s18, %s166_s18 }
  0x13   :  { %p173_p8 = por %p172_p7, %p171_p6 }
  0x15   :  { %p174_p9 = pnand %p173_p8, %p167_p5 }
  0x17   :  { %177 = shalt.err (!%p174_p9)
}
  0x18   :  { %45 = dma.hbm_to_vmem [thread:$0]  %s222_s1, 256, %s40_s17, [#allocation7], %s193_s12, %s193_s12, %s194_s13  }
  0x19   :  { %186 = dma.done.wait [#allocation4], 256  }
  0x1a   :  { %187 = vsyncadd [#allocation4], 4294967040 }
  0x1b   :  { %188 = dma.done.wait [#allocation7], 256  }
  0x1c   :  { %189 = vsyncadd [#allocation7], 4294967040  ;;  %v65_v0 = vld [vmem:[#allocation3] sm:$0xff]  ;;  %v66_v1 = vld [vmem:[#allocation3 + $0x8] sm:$0xff]  ;;  %s196_s1 = smov [#allocation8]  }
  0x1d   :  { %v67_v2 = vld [vmem:[#allocation6] sm:$0xff]  ;;  %v68_v3 = vld [vmem:[#allocation6 + $0x8] sm:$0xff] }
  0x1e   :  { %v69_v4 = vsub.f32 %v65_v0, %v67_v2  ;;  %v70_v5 = vsub.f32 %v66_v1, %v68_v3 }
  0x20   :  { %v71_v6 = vmul.f32 %v69_v4, %v69_v4  ;;  %v72_v7 = vmul.f32 %v70_v5, %v70_v5 }
  0x22   :  { %v73_v8 = vadd.f32 1e-06, %v71_v6  ;;  %v74_v9 = vadd.f32 1e-06, %v72_v7 }
  0x24   :  { %134 = vrsqrt.f32 %v73_v8  ;;  %vm77_vm0 = vcmp.eq.f32.partialorder %v73_v8, inf  ;;  %v80_v11 = vand.u32 2147483648, %v73_v8  ;;  %vm79_vm1 = vcmp.eq.f32.partialorder %v73_v8, 0.0 }
  0x25   :  { %136 = vrsqrt.f32 %v74_v9  ;;  %vm84_vm2 = vcmp.eq.f32.partialorder %v74_v9, inf  ;;  %v87_v14 = vand.u32 2147483648, %v74_v9  ;;  %vm86_vm3 = vcmp.eq.f32.partialorder %v74_v9, 0.0 }
  0x31   :  { %v135_v10 = vpop.eup %134 }
  0x32   :  { %v137_v12 = vpop.eup %136  ;;  %v76_v13 = vmul.f32 %v135_v10, %v73_v8 }
  0x33   :  { %v83_v15 = vmul.f32 %v137_v12, %v74_v9 }
  0x34   :  { %v78_v16 = vsel %vm77_vm0, %v73_v8, %v76_v13 }
  0x35   :  { %v81_v17 = vsel %vm79_vm1, %v80_v11, %v78_v16  ;;  %v85_v18 = vsel %vm84_vm2, %v74_v9, %v83_v15 }
  0x36   :  { %v88_v19 = vsel %vm86_vm3, %v87_v14, %v85_v18 }
  0x37   :  { %v90_v20 = vadd.f32 %v88_v19, %v81_v17 }
  0x39   :  { %97 = vadd.xlane.f32.xlu0 %v90_v20 }
  0xc2   :  { %v98_v21 = vpop.xlane.xlu0 %97 }
  0xc3   :  { %v99_v22 = vrot.slane %v98_v21, 4 }
  0xc5   :  { %v100_v23 = vadd.f32 %v99_v22, %v98_v21 }
  0xc7   :  { %v101_v24 = vrot.slane %v100_v23, 2 }
  0xc9   :  { %v102_v25 = vadd.f32 %v101_v24, %v100_v23 }
  0xcb   :  { %v103_v26 = vrot.slane %v102_v25, 1 }
  0xcd   :  { %v104_v27 = vadd.f32 %v103_v26, %v102_v25 }
  0xcf   :  { %127 = vpush %v104_v27 }
 0x100   :  { %s128_s0 = spop %127 }
 0x101   :  { %107 = sst [smem:[#allocation8]] %s128_s0 }
 0x102   :  { %115 = dma.smem_to_hbm %s196_s1, 16, %s223_s2, [#allocation5]  }
 0x103   :  { %190 = dma.done.wait [#allocation5], 16  }
 0x104   :  { %191 = vsyncadd [#allocation5], 4294967280 }
 0x105   :  { %119 = sfence }
 0x106   :  { %120 = vsyncpa [#allocation4], 1 }
 0x107   :  { %121 = vsyncpa [#allocation7], 1 }
 0x108   :  { %122 = vsyncpa [#allocation5], 1 }

</bundles_post_ra>
